<compile_context>
chip_gen: v7x
topology: tpu7x:2x2x1
jax: 0.10.0
libtpu: 0.0.40
codegen_flags: <defaults>
</compile_context>

<pallas_src>
import jax
import jax.numpy as jnp
from jax.experimental import pallas as pl
from jax.experimental.pallas import tpu as pltpu


# ----------------------------------------------------------------------------
# Hardware-aware budgets
# ----------------------------------------------------------------------------
def _tpu_budgets():
    """Generation-aware block / VMEM budgets (v7x has only 64 MiB VMEM/TC)."""
    vmem_bytes = None
    try:
        vmem_bytes = int(pltpu.get_tpu_info().vmem_capacity_bytes)
    except Exception:
        vmem_bytes = None
    if vmem_bytes is None:
        try:
            kind = jax.devices()[0].device_kind.lower()
            vmem_bytes = 64 * 1024 * 1024 if ("7" in kind) else 128 * 1024 * 1024
        except Exception:
            vmem_bytes = 64 * 1024 * 1024          # conservative default
    if vmem_bytes >= 100 * 1024 * 1024:            # v5e / v6e: 128 MiB physical
        return dict(max_block_bytes=4 * 1024 * 1024,
                    max_row_bytes=8 * 1024 * 1024,
                    vmem_limit_bytes=64 * 1024 * 1024)
    else:                                          # v7x: 64 MiB per TensorCore
        return dict(max_block_bytes=2 * 1024 * 1024,
                    max_row_bytes=4 * 1024 * 1024,
                    vmem_limit_bytes=32 * 1024 * 1024)


def _supports_bf16_vpu():
    """bf16 VPU/EUP exists on v6e/v7x but not on v5e or older."""
    try:
        kind = jax.devices()[0].device_kind.lower()
    except Exception:
        return False
    return any(t in kind for t in ("v6", "v7", "7x", "trillium"))


# ----------------------------------------------------------------------------
# Kernels
# ----------------------------------------------------------------------------
def _make_single_pass_kernel(use_mxu, lowp):
    """One batch row (C, HW) resident in VMEM: max pool + channel-gate MLP +
    spatial gate + fused combine in a single read of x (2x|x| HBM traffic)."""

    def kernel(x_ref, wsp_ref, w1_ref, b1_ref, w2t_ref, b2_ref, bsp_ref, o_ref):
        x = x_ref[0]                                                  # (C, HW)

        # ---- ChannelGate: global max pool + two 1x1-conv layers -------------
        # Broadcast-multiply + sublane/lane reductions only: no transposes,
        # no tiny matmuls -> robust lowering for any C.
        m = jnp.max(x, axis=1, keepdims=True).astype(jnp.float32)     # (C, 1)
        h = jnp.maximum(
            jnp.sum(w1_ref[...] * m, axis=0, keepdims=True) + b1_ref[...],
            0.0)                                                      # (1, C/2)
        g2 = jax.nn.sigmoid(
            jnp.sum(w2t_ref[...] * h, axis=1, keepdims=True) + b2_ref[...])  # (C,1)

        # ---- SpatialGate: 1x1 conv C->1 (+bias), sigmoid --------------------
        if use_mxu:
            s = jnp.dot(wsp_ref[...], x, preferred_element_type=jnp.float32)  # (1,HW)
        else:
            s = jnp.sum(wsp_ref[...] * x.astype(jnp.float32),
                        axis=0, keepdims=True)
        g1 = jax.nn.sigmoid(s + bsp_ref[0])                           # (1, HW)

        # ---- Fused combine: (g1 + g2) * x -----------------------------------
        if lowp:  # bf16 on v6e/v7x: keep the big elementwise work packed
            o_ref[0] = (g1.astype(x.dtype) + g2.astype(x.dtype)) * x
        else:
            o_ref[0] = ((g1 + g2) * x.astype(jnp.float32)).astype(o_ref.dtype)

    return kernel


def _make_tiled_kernel(use_mxu, lowp):
    """Fallback: SpatialGate + combine on a lane-dense (C, t_hw) tile;
    ChannelGate result g2 is precomputed in the wrapper."""

    def kernel(x_ref, wsp_ref, g2_ref, bsp_ref, o_ref):
        x = x_ref[0]                                                  # (C, t_hw)
        if use_mxu:
            s = jnp.dot(wsp_ref[...], x, preferred_element_type=jnp.float32)
        else:
            s = jnp.sum(wsp_ref[...] * x.astype(jnp.float32),
                        axis=0, keepdims=True)
        g1 = jax.nn.sigmoid(s + bsp_ref[0])                           # (1, t_hw)
        if lowp:
            o_ref[0] = (g1.astype(x.dtype) + g2_ref[0]) * x
        else:
            o_ref[0] = ((g1 + g2_ref[0]) * x.astype(jnp.float32)).astype(o_ref.dtype)

    return kernel


# ----------------------------------------------------------------------------
# Tiling
# ----------------------------------------------------------------------------
def _pick_hw_tile(HW, C, eff_itemsize, max_block_bytes):
    """Lane tile along H*W for the tiled fallback kernel.

    Sized by bytes (target ~max_block_bytes per x block), accounting for
    sublane padding when C < 8. Multiple of 128 (lane dense); a divisor of HW
    is preferred so edge stores stay unmasked; otherwise the last block's
    out-of-range lanes are masked (safe: the math is purely per-lane).
    """
    c_pad = ((C + 7) // 8) * 8
    budget = max(128, (max_block_bytes // (c_pad * eff_itemsize)) // 128 * 128)
    if HW <= budget:
        return HW                       # whole row in one lane block
    if HW % 128 == 0:
        t = budget
        while t >= 128:
            if HW % t == 0:
                return t                # largest aligned divisor within budget
            t -= 128
    return budget                        # masked edge block


# ----------------------------------------------------------------------------
# Wrapper
# ----------------------------------------------------------------------------
def shortcut_attention(x_nchw, params, *, force_two_pass=False,
                       max_block_bytes=None, max_row_bytes=None):
    """x_nchw: (N, C, H, W). Returns g1*x + g2*x with the module's semantics."""
    N, C, H, W = x_nchw.shape
    HW = H * W
    Ch = C // 2
    dtype = x_nchw.dtype
    itemsize = x_nchw.dtype.itemsize

    budgets = dict(_tpu_budgets())
    if max_block_bytes is not None:
        budgets["max_block_bytes"] = max_block_bytes
    if max_row_bytes is not None:
        budgets["max_row_bytes"] = max_row_bytes

    lowp = (dtype == jnp.bfloat16) and _supports_bf16_vpu()
    use_mxu = lowp or C >= 32            # MXU cutover lowered to C >= 32
    # f32 intermediates dominate VMEM in the non-lowp path; budget with that.
    eff_itemsize = itemsize if lowp else max(itemsize, 4)

    x3 = x_nchw.reshape(N, C, HW)        # free reshape of NCHW; HW on lanes

    wsp_k = (params["wsp"].reshape(1, C) if use_mxu
             else params["wsp"].reshape(C, 1)).astype(
                 dtype if use_mxu else jnp.float32)
    bsp_k = params["bsp"].reshape(1).astype(jnp.float32)   # scalar bias -> SMEM

    c_pad = ((C + 7) // 8) * 8
    row_bytes = c_pad * HW * eff_itemsize
    single_pass = (not force_two_pass) and (row_bytes <= budgets["max_row_bytes"])

    if single_pass:
        # ---- One read of x: max pool + MLP + both gates + combine in-kernel.
        w1_k = params["w1"].astype(jnp.float32)                 # (C, C/2)
        b1_k = params["b1"].reshape(1, Ch).astype(jnp.float32)  # (1, C/2)
        w2t_k = params["w2"].T.astype(jnp.float32)              # (C, C/2) = W2^T
        b2_k = params["b2"].reshape(C, 1).astype(jnp.float32)   # (C, 1)

        cost = pl.CostEstimate(
            flops=int(6 * N * C * HW),
            transcendentals=int(N * (HW + C + Ch)),
            bytes_accessed=int(2 * N * C * HW * itemsize),
        )
        out3 = pl.pallas_call(
            _make_single_pass_kernel(use_mxu, lowp),
            out_shape=jax.ShapeDtypeStruct((N, C, HW), dtype),
            grid_spec=pltpu.PrefetchScalarGridSpec(
                num_scalar_prefetch=0,
                grid=(N,),
                in_specs=[
                    pl.BlockSpec((1, C, HW), lambda n: (n, 0, 0)),      # x row
                    pl.BlockSpec(wsp_k.shape, lambda n: (0, 0)),        # spatial w
                    pl.BlockSpec((C, Ch), lambda n: (0, 0)),            # W1
                    pl.BlockSpec((1, Ch), lambda n: (0, 0)),            # b1
                    pl.BlockSpec((C, Ch), lambda n: (0, 0)),            # W2^T
                    pl.BlockSpec((C, 1), lambda n: (0, 0)),             # b2
                    pl.BlockSpec(memory_space=pltpu.MemorySpace.SMEM),  # spatial bias
                ],
                out_specs=pl.BlockSpec((1, C, HW), lambda n: (n, 0, 0)),
            ),
            compiler_params=pltpu.CompilerParams(
                dimension_semantics=("parallel",),
                vmem_limit_bytes=budgets["vmem_limit_bytes"],
            ),
            cost_estimate=cost,
        )(x3, wsp_k, w1_k, b1_k, w2t_k, b2_k, bsp_k)
        return out3.reshape(N, C, H, W)

    # ---- Fallback: batch row does not fit VMEM. ChannelGate hoisted to JAX
    # (one extra read of x); kernel streams byte-sized lane tiles of HW.
    hi = jax.lax.Precision.HIGHEST
    m = jnp.max(x3, axis=2).astype(jnp.float32)                         # (N, C)
    h = jnp.maximum(jnp.matmul(m, params["w1"], precision=hi) + params["b1"], 0.0)
    g2 = jax.nn.sigmoid(jnp.matmul(h, params["w2"], precision=hi) + params["b2"])
    g2 = g2.reshape(N, C, 1).astype(dtype if lowp else jnp.float32)

    t_hw = _pick_hw_tile(HW, C, eff_itemsize, budgets["max_block_bytes"])
    n_hw = pl.cdiv(HW, t_hw)

    cost = pl.CostEstimate(
        flops=int(4 * N * C * HW),
        transcendentals=int(N * HW),
        bytes_accessed=int(2 * N * C * HW * itemsize),
    )
    out3 = pl.pallas_call(
        _make_tiled_kernel(use_mxu, lowp),
        out_shape=jax.ShapeDtypeStruct((N, C, HW), dtype),
        grid_spec=pltpu.PrefetchScalarGridSpec(
            num_scalar_prefetch=0,
            grid=(N, n_hw),
            in_specs=[
                pl.BlockSpec((1, C, t_hw), lambda n, t: (n, 0, t)),     # x tile
                pl.BlockSpec(wsp_k.shape, lambda n, t: (0, 0)),         # spatial w
                pl.BlockSpec((1, C, 1), lambda n, t: (n, 0, 0)),        # g2 gate
                pl.BlockSpec(memory_space=pltpu.MemorySpace.SMEM),      # spatial bias
            ],
            out_specs=pl.BlockSpec((1, C, t_hw), lambda n, t: (n, 0, t)),
        ),
        compiler_params=pltpu.CompilerParams(
            dimension_semantics=("parallel", "parallel"),
            vmem_limit_bytes=budgets["vmem_limit_bytes"],
        ),
        cost_estimate=cost,
    )(x3, wsp_k, g2, bsp_k)
    return out3.reshape(N, C, H, W)


# ----------------------------------------------------------------------------
# Params / reference
# ----------------------------------------------------------------------------
def init_params(key, C):
    """Deterministic params matching the PyTorch module's shapes.

    PyTorch conv weights are (out_ch, in_ch, 1, 1); stored here transposed as
    (in_ch, out_ch) so channel rows multiply directly.
    """
    Ch = C // 2
    k = jax.random.split(key, 6)
    return {
        # SpatialGate.conv : Conv2d(C, 1, 1)
        "wsp": jax.random.normal(k[0], (C, 1), jnp.float32) * 0.1,
        "bsp": jax.random.normal(k[1], (1, 1), jnp.float32) * 0.1,
        # ChannelGate.conv1 : Conv2d(C, C//2, 1)
        "w1": jax.random.normal(k[2], (C, Ch), jnp.float32) * 0.1,
        "b1": jax.random.normal(k[3], (1, Ch), jnp.float32) * 0.1,
        # ChannelGate.conv2 : Conv2d(C//2, C, 1)
        "w2": jax.random.normal(k[4], (Ch, C), jnp.float32) * 0.1,
        "b2": jax.random.normal(k[5], (1, C), jnp.float32) * 0.1,
    }


def _reference(x_nchw, params):
    """Plain-JAX reference mirroring the PyTorch forward (true f32 matmuls)."""
    N, C, H, W = x_nchw.shape
    hi = jax.lax.Precision.HIGHEST
    x = jnp.transpose(x_nchw, (0, 2, 3, 1)).reshape(N, H * W, C).astype(jnp.float32)
    g1 = jax.nn.sigmoid(jnp.matmul(x, params["wsp"], precision=hi) + params["bsp"])
    m = jnp.max(x, axis=1, keepdims=True)                               # (N,1,C)
    h = jnp.maximum(jnp.matmul(m, params["w1"], precision=hi) + params["b1"], 0.0)
    g2 = jax.nn.sigmoid(jnp.matmul(h, params["w2"], precision=hi) + params["b2"])
    out = (g1 * x + g2 * x).astype(x_nchw.dtype)
    return jnp.transpose(out.reshape(N, H, W, C), (0, 3, 1, 2))


# ----------------------------------------------------------------------------
# Self-test
# ----------------------------------------------------------------------------
if __name__ == "__main__":
    key = jax.random.PRNGKey(0)

    # Shapes exercise: tiny-C VPU path, C>=32 MXU path, and HW % 128 != 0.
    shapes = [(2, 4, 16, 16), (2, 64, 16, 16), (2, 8, 20, 16)]

    for i, (N, C, H, W) in enumerate(shapes):
        key, kx, kp = jax.random.split(key, 3)
        x = jax.random.normal(kx, (N, C, H, W), jnp.float32)
        params = init_params(kp, C)
        ref = _reference(x, params)
        # MXU spatial-conv path may use reduced-precision f32 passes; allow for it.
        tol = 1e-2 if C >= 32 else 1e-4

        # Single-pass kernel (one HBM read of x).
        out = jax.block_until_ready(shortcut_attention(x, params))
        assert out.shape == (N, C, H, W)
        assert jnp.allclose(out, ref, atol=tol, rtol=tol), f"single-pass mismatch {i}"

        # Tiled fallback kernel (forced small tile also covers masked edges).
        out2 = jax.block_until_ready(
            shortcut_attention(x, params, force_two_pass=True, max_block_bytes=4096))
        assert jnp.allclose(out2, ref, atol=tol, rtol=tol), f"tiled mismatch {i}"

    print("KERNEL_OK")
</pallas_src>

<mosaic_0001>
module attributes {stable_mosaic.version = 11 : i64} {
  func.func @kernel(%arg0: i32, %arg1: memref<1x4x256xf32, #tpu.memory_space<vmem>>, %arg2: memref<4x1xf32, #tpu.memory_space<vmem>>, %arg3: memref<4x2xf32, #tpu.memory_space<vmem>>, %arg4: memref<1x2xf32, #tpu.memory_space<vmem>>, %arg5: memref<4x2xf32, #tpu.memory_space<vmem>>, %arg6: memref<4x1xf32, #tpu.memory_space<vmem>>, %arg7: memref<1xf32, #tpu.memory_space<smem>>, %arg8: memref<1x4x256xf32, #tpu.memory_space<vmem>>) attributes {dimension_semantics = [#tpu.dimension_semantics<parallel>], iteration_bounds = array<i64: 2>, scalar_prefetch = 0 : i64, scratch_operands = 0 : i64, tpu.core_type = #tpu.core_type<tc>, window_params = [{transform_indices = @transform_0, window_bounds = array<i64: 1, 4, 256>}, {pipeline_mode = #tpu.pipeline_mode<synchronous>, transform_indices = @transform_1, window_bounds = array<i64: 4, 1>}, {pipeline_mode = #tpu.pipeline_mode<synchronous>, transform_indices = @transform_2, window_bounds = array<i64: 4, 2>}, {pipeline_mode = #tpu.pipeline_mode<synchronous>, transform_indices = @transform_3, window_bounds = array<i64: 1, 2>}, {pipeline_mode = #tpu.pipeline_mode<synchronous>, transform_indices = @transform_4, window_bounds = array<i64: 4, 2>}, {pipeline_mode = #tpu.pipeline_mode<synchronous>, transform_indices = @transform_5, window_bounds = array<i64: 4, 1>}, {transform_indices = @transform_6, window_bounds = array<i64: 1>}, {transform_indices = @transform_7, window_bounds = array<i64: 1, 4, 256>}]} {
    %c0 = arith.constant 0 : index
    %c0_0 = arith.constant 0 : index
    %c0_1 = arith.constant 0 : index
    %0 = vector.load %arg1[%c0, %c0_0, %c0_1] : memref<1x4x256xf32, #tpu.memory_space<vmem>>, vector<1x4x256xf32>
    %1 = vector.shape_cast %0 : vector<1x4x256xf32> to vector<4x256xf32>
    %cst = arith.constant dense<0xFF800000> : vector<4xf32>
    %2 = vector.multi_reduction <maximumf>, %1, %cst [1] : vector<4x256xf32> to vector<4xf32>
    %3 = vector.shape_cast %2 : vector<4xf32> to vector<4x1xf32>
    %c0_2 = arith.constant 0 : index
    %c0_3 = arith.constant 0 : index
    %4 = vector.load %arg3[%c0_2, %c0_3] : memref<4x2xf32, #tpu.memory_space<vmem>>, vector<4x2xf32>
    %5 = vector.broadcast %3 : vector<4x1xf32> to vector<4x2xf32>
    %6 = arith.mulf %4, %5 : vector<4x2xf32>
    %cst_4 = arith.constant dense<0.000000e+00> : vector<2xf32>
    %7 = vector.multi_reduction <add>, %6, %cst_4 [0] : vector<4x2xf32> to vector<2xf32>
    %8 = vector.shape_cast %7 : vector<2xf32> to vector<1x2xf32>
    %c0_5 = arith.constant 0 : index
    %c0_6 = arith.constant 0 : index
    %9 = vector.load %arg4[%c0_5, %c0_6] : memref<1x2xf32, #tpu.memory_space<vmem>>, vector<1x2xf32>
    %10 = arith.addf %8, %9 : vector<1x2xf32>
    %cst_7 = arith.constant 0.000000e+00 : f32
    %11 = vector.broadcast %cst_7 : f32 to vector<1x2xf32>
    %12 = arith.maximumf %10, %11 : vector<1x2xf32>
    %c0_8 = arith.constant 0 : index
    %c0_9 = arith.constant 0 : index
    %13 = vector.load %arg5[%c0_8, %c0_9] : memref<4x2xf32, #tpu.memory_space<vmem>>, vector<4x2xf32>
    %14 = vector.broadcast %12 : vector<1x2xf32> to vector<4x2xf32>
    %15 = arith.mulf %13, %14 : vector<4x2xf32>
    %cst_10 = arith.constant dense<0.000000e+00> : vector<4xf32>
    %16 = vector.multi_reduction <add>, %15, %cst_10 [1] : vector<4x2xf32> to vector<4xf32>
    %17 = vector.shape_cast %16 : vector<4xf32> to vector<4x1xf32>
    %c0_11 = arith.constant 0 : index
    %c0_12 = arith.constant 0 : index
    %18 = vector.load %arg6[%c0_11, %c0_12] : memref<4x1xf32, #tpu.memory_space<vmem>>, vector<4x1xf32>
    %19 = arith.addf %17, %18 : vector<4x1xf32>
    %20 = arith.negf %19 : vector<4x1xf32>
    %21 = math.exp %20 : vector<4x1xf32>
    %cst_13 = arith.constant 1.000000e+00 : f32
    %22 = vector.broadcast %cst_13 : f32 to vector<4x1xf32>
    %23 = arith.addf %22, %21 : vector<4x1xf32>
    %24 = arith.divf %22, %23 : vector<4x1xf32>
    %c0_14 = arith.constant 0 : index
    %c0_15 = arith.constant 0 : index
    %25 = vector.load %arg2[%c0_14, %c0_15] : memref<4x1xf32, #tpu.memory_space<vmem>>, vector<4x1xf32>
    %26 = vector.broadcast %25 : vector<4x1xf32> to vector<4x256xf32>
    %27 = arith.mulf %26, %1 : vector<4x256xf32>
    %cst_16 = arith.constant dense<0.000000e+00> : vector<256xf32>
    %28 = vector.multi_reduction <add>, %27, %cst_16 [0] : vector<4x256xf32> to vector<256xf32>
    %29 = vector.shape_cast %28 : vector<256xf32> to vector<1x256xf32>
    %c0_17 = arith.constant 0 : index
    %30 = memref.load %arg7[%c0_17] : memref<1xf32, #tpu.memory_space<smem>>
    %31 = vector.broadcast %30 : f32 to vector<1x256xf32>
    %32 = arith.addf %29, %31 : vector<1x256xf32>
    %33 = arith.negf %32 : vector<1x256xf32>
    %34 = math.exp %33 : vector<1x256xf32>
    %cst_18 = arith.constant 1.000000e+00 : f32
    %35 = vector.broadcast %cst_18 : f32 to vector<1x256xf32>
    %36 = arith.addf %35, %34 : vector<1x256xf32>
    %37 = arith.divf %35, %36 : vector<1x256xf32>
    %38 = vector.broadcast %37 : vector<1x256xf32> to vector<4x256xf32>
    %39 = vector.broadcast %24 : vector<4x1xf32> to vector<4x256xf32>
    %40 = arith.addf %38, %39 : vector<4x256xf32>
    %41 = arith.mulf %40, %1 : vector<4x256xf32>
    %c0_19 = arith.constant 0 : index
    %c0_20 = arith.constant 0 : index
    %c0_21 = arith.constant 0 : index
    %42 = vector.load %arg8[%c0_19, %c0_20, %c0_21] : memref<1x4x256xf32, #tpu.memory_space<vmem>>, vector<1x4x256xf32>
    %43 = vector.shape_cast %42 : vector<1x4x256xf32> to vector<4x256xf32>
    %44 = vector.shape_cast %41 : vector<4x256xf32> to vector<1x4x256xf32>
    tpu.vector_store %arg8[%c0_19, %c0_20, %c0_21], %44 {strides = array<i32>} : memref<1x4x256xf32, #tpu.memory_space<vmem>>, vector<1x4x256xf32>,
    return
  }
  func.func @transform_0(%arg0: i32) -> (i32, i32, i32) {
    %c0_i32 = arith.constant 0 : i32
    %c0_i32_0 = arith.constant 0 : i32
    %c0_i32_1 = arith.constant 0 : i32
    return %arg0, %c0_i32, %c0_i32_0 : i32, i32, i32
  }
  func.func @transform_1(%arg0: i32) -> (i32, i32) {
    %c0_i32 = arith.constant 0 : i32
    %c0_i32_0 = arith.constant 0 : i32
    %c0_i32_1 = arith.constant 0 : i32
    return %c0_i32, %c0_i32_0 : i32, i32
  }
  func.func @transform_2(%arg0: i32) -> (i32, i32) {
    %c0_i32 = arith.constant 0 : i32
    %c0_i32_0 = arith.constant 0 : i32
    %c0_i32_1 = arith.constant 0 : i32
    return %c0_i32, %c0_i32_0 : i32, i32
  }
  func.func @transform_3(%arg0: i32) -> (i32, i32) {
    %c0_i32 = arith.constant 0 : i32
    %c0_i32_0 = arith.constant 0 : i32
    %c0_i32_1 = arith.constant 0 : i32
    return %c0_i32, %c0_i32_0 : i32, i32
  }
  func.func @transform_4(%arg0: i32) -> (i32, i32) {
    %c0_i32 = arith.constant 0 : i32
    %c0_i32_0 = arith.constant 0 : i32
    %c0_i32_1 = arith.constant 0 : i32
    return %c0_i32, %c0_i32_0 : i32, i32
  }
  func.func @transform_5(%arg0: i32) -> (i32, i32) {
    %c0_i32 = arith.constant 0 : i32
    %c0_i32_0 = arith.constant 0 : i32
    %c0_i32_1 = arith.constant 0 : i32
    return %c0_i32, %c0_i32_0 : i32, i32
  }
  func.func @transform_6(%arg0: i32) -> i32 {
    %c0_i32 = arith.constant 0 : i32
    %c0_i32_0 = arith.constant 0 : i32
    return %c0_i32 : i32
  }
  func.func @transform_7(%arg0: i32) -> (i32, i32, i32) {
    %c0_i32 = arith.constant 0 : i32
    %c0_i32_0 = arith.constant 0 : i32
    %c0_i32_1 = arith.constant 0 : i32
    return %arg0, %c0_i32, %c0_i32_0 : i32, i32, i32
  }
}

</mosaic_0001>

<bundles_post_ra>
// kernel: tpu_custom_call.1
= control target key start
LH: loop header
LB: loop body
LE: loop exit
PB: predicated region body
PF: predicated region fallthrough
CT: control target
= control target key end

     0   :  { %s1349_s0 = inlined_call_operand.hbm [shape: f32[2,4,256], index: 0, kind: input, shape index: {}]   ;;  %s1350_s1 = inlined_call_operand.hbm [shape: f32[4,1], index: 1, kind: input, shape index: {}]   ;;  %s1351_s2 = inlined_call_operand.hbm [shape: f32[4,2], index: 2, kind: input, shape index: {}]   ;;  %s1352_s3 = inlined_call_operand.hbm [shape: f32[1,2], index: 3, kind: input, shape index: {}]   ;;  %s1353_s4 = inlined_call_operand.hbm [shape: f32[4,2], index: 4, kind: input, shape index: {}]   ;;  %s1354_s5 = inlined_call_operand.hbm [shape: f32[4,1], index: 5, kind: input, shape index: {}]   ;;  %s1355_s6 = inlined_call_operand.<no memory space> [shape: f32[1], index: 6, kind: input, shape index: {}]   ;;  %s1356_s7 = inlined_call_operand.hbm [shape: f32[2,4,256], index: 7, kind: output, shape index: {}]  }
   0x1   :  { %12 = sst [smem:[#allocation2]] %s1355_s6 }
   0x2   :  { %13 = vsyncpa [#allocation4], 0 }
   0x3   :  { %15 = vsyncpa [#allocation4 + $0x1], 0 }
   0x4   :  { %16 = vsyncpa [#allocation7], 0 }
   0x5   :  { %17 = vsyncpa [#allocation10], 0 }
   0x6   :  { %18 = vsyncpa [#allocation13], 0 }
   0x7   :  { %19 = vsyncpa [#allocation5], 0 }
   0x8   :  { %21 = vsyncpa [#allocation5 + $0x1], 0  ;;  %s1027_s26 = smov 0   ;;  %s1029_s27 = smov 0  }
   0x9   :  { %s1031_s28 = smov 0   ;;  %s1033_s29 = smov 0  }
   0xa LB: > { %s976_s6 = smov [#allocation6]   ;;  %s1048_s8 = sadd.s32 4294967295, %s974_s29   ;;  %s974_s29 = sphi %s1033_s29, %s1381_s29   ;;  %s970_s28 = sphi %s1031_s28, %s1380_s28   ;;  %s966_s27 = sphi %s1029_s27, %s1379_s27   ;;  %s962_s26 = sphi %s1027_s26, %s1378_s26  }
   0xb   : > { %s223_s30 = sshll.u32 %s976_s6, 4  ;;  %p585_p0 = scmp.ge.s32.totalorder %s974_s29, 1  ;;  %s1053_s30 = int_to_ptr.vmem [resolvable:$true] %s223_s30 }
   0xc   : > { %p1357_p1 = scmp.eq.s32.totalorder %s1048_s8, 0  ;;  %p210_p2 = scmp.lt.s32.totalorder %s974_s29, 3 }
   0xd   : > { %s977_s10 = smov [#allocation9]   ;;  %s978_s12 = smov [#allocation8]  }
   0xe   : > { %p1055_p3 = pnand %p585_p0, %p210_p2  ;;  %s245_s11 = sshll.u32 %s977_s10, 4  ;;  %s1062_s11 = int_to_ptr.vmem [resolvable:$true] %s245_s11 }
   0xf   : > { %s234_s13 = sshll.u32 %s978_s12, 4  ;;  %s979_s15 = smov [#allocation11]   ;;  %s1070_s13 = int_to_ptr.vmem [resolvable:$true] %s234_s13 }
  0x10   : > { %s1360_s9 = scalar_select %p1055_p3, 1, 0 }
  0x11   : > { %p637_p5 = pneg %p1055_p3  ;;  %s1072_s16 = sshll.u32 %s979_s15, 4  ;;  %s257_s16 = int_to_ptr.vmem [resolvable:$true] %s1072_s16 }
  0x12   : > { %s726_s19 = scalar_lea.hbm %s1350_s1, 64 }
  0x13   : > { %p1066_p6 = pnand %p637_p5, %p1357_p1  ;;  %p727_p7 = scmp.ne.s32.totalorder %s1350_s1, %s726_s19 }
  0x14   : > { %p733_p11 = scmp.lt.u32.totalorder %s726_s19, %s1350_s1 }
  0x15   : > { %p1082_p8 = pneg %p1066_p6 }
  0x17   : > { %p729_p9 = pnand %p1082_p8, %p727_p7 }
  0x19   : > { %p730_p10 = pneg %p729_p9 }
  0x1b   : > { %p735_p12 = pnand %p733_p11, %p730_p10 }
  0x1d   : > { %738 = shalt.err (!%p735_p12)
}
  0x1e   : > { %s739_s25 = scalar_lea.vmem %s1053_s30, 64  ;;  %p747_p5 = scmp.lt.s32.totalorder %s1053_s30, %s1053_s30 }
  0x1f   : > { %p740_p13 = scmp.ne.s32.totalorder %s1053_s30, %s739_s25  ;;  %p748_p4 = scmp.lt.s32.totalorder %s739_s25, %s739_s25 }
  0x21   : > { %p742_p0 = pnand %p740_p13, %p1082_p8  ;;  %p749_p7 = por %p748_p4, %p747_p5 }
  0x23   : > { %p743_p2 = pneg %p742_p0 }
  0x25   : > { %p750_p9 = pnand %p749_p7, %p743_p2 }
  0x27   : > { %753 = shalt.err (!%p750_p9)
}
  0x28   : > { %640 = dma.hbm_to_vmem [thread:$0]  (!%p1066_p6), %s1350_s1, 64, %s1053_s30, [#allocation7]  }
  0x29   : > { %s754_s17 = scalar_lea.hbm %s1352_s3, 16 }
  0x2a   : > { %p755_p10 = scmp.ne.s32.totalorder %s1352_s3, %s754_s17  ;;  %p761_p12 = scmp.lt.u32.totalorder %s754_s17, %s1352_s3 }
  0x2c   : > { %p757_p4 = pnand %p755_p10, %p1082_p8 }
  0x2e   : > { %p758_p11 = pneg %p757_p4 }
  0x30   : > { %p763_p13 = pnand %p761_p12, %p758_p11 }
  0x32   : > { %766 = shalt.err (!%p763_p13)
}
  0x33   : > { %s767_s30 = scalar_lea.vmem %s1062_s11, 16  ;;  %s774_s23 = scalar_lea.vmem %s1062_s11, 32 }
  0x34   : > { %p768_p0 = scmp.ne.s32.totalorder %s1062_s11, %s767_s30  ;;  %p775_p7 = scmp.lt.s32.totalorder %s1062_s11, %s1062_s11 }
  0x35   : > { %p776_p9 = scmp.lt.s32.totalorder %s774_s23, %s767_s30 }
  0x36   : > { %p770_p2 = pnand %p768_p0, %p1082_p8 }
  0x37   : > { %p777_p10 = por %p776_p9, %p775_p7 }
  0x38   : > { %p771_p5 = pneg %p770_p2 }
  0x3a   : > { %p778_p4 = pnand %p777_p10, %p771_p5 }
  0x3c   : > { %781 = shalt.err (!%p778_p4)
}
  0x3d   : > { %646 = dma.hbm_to_vmem [thread:$0]  (!%p1066_p6), %s1352_s3, 16, %s1062_s11, [#allocation10]  }
  0x3e   : > { %s782_s12 = scalar_lea.hbm %s1351_s2, 64 }
  0x3f   : > { %p783_p11 = scmp.ne.s32.totalorder %s1351_s2, %s782_s12  ;;  %p789_p0 = scmp.lt.u32.totalorder %s782_s12, %s1351_s2 }
  0x41   : > { %p785_p12 = pnand %p783_p11, %p1082_p8 }
  0x43   : > { %p786_p13 = pneg %p785_p12 }
  0x45   : > { %p791_p2 = pnand %p789_p0, %p786_p13 }
  0x47   : > { %794 = shalt.err (!%p791_p2)
}
  0x48   : > { %s795_s11 = scalar_lea.vmem %s1070_s13, 64  ;;  %p803_p10 = scmp.lt.s32.totalorder %s1070_s13, %s1070_s13 }
  0x49   : > { %p796_p5 = scmp.ne.s32.totalorder %s1070_s13, %s795_s11  ;;  %p804_p4 = scmp.lt.s32.totalorder %s795_s11, %s795_s11 }
  0x4b   : > { %p798_p7 = pnand %p796_p5, %p1082_p8  ;;  %p805_p11 = por %p804_p4, %p803_p10 }
  0x4d   : > { %p799_p9 = pneg %p798_p7 }
  0x4f   : > { %p806_p12 = pnand %p805_p11, %p799_p9 }
  0x51   : > { %809 = shalt.err (!%p806_p12)
}
  0x52   : > { %643 = dma.hbm_to_vmem [thread:$0]  (!%p1066_p6), %s1351_s2, 64, %s1070_s13, [#allocation7]  }
  0x53   : > { %s980_s30 = smov [#allocation12]   ;;  %s810_s6 = scalar_lea.hbm %s1353_s4, 64 }
  0x54   : > { %s267_s23 = sshll.u32 %s980_s30, 4  ;;  %p811_p13 = scmp.ne.s32.totalorder %s1353_s4, %s810_s6  ;;  %s268_s23 = int_to_ptr.vmem [resolvable:$true] %s267_s23 }
  0x55   : > { %p817_p5 = scmp.lt.u32.totalorder %s810_s6, %s1353_s4 }
  0x56   : > { %p813_p0 = pnand %p811_p13, %p1082_p8 }
  0x58   : > { %p814_p2 = pneg %p813_p0 }
  0x5a   : > { %p819_p7 = pnand %p817_p5, %p814_p2 }
  0x5c   : > { %822 = shalt.err (!%p819_p7)
}
  0x5d   : > { %s823_s13 = scalar_lea.vmem %s257_s16, 64  ;;  %p831_p11 = scmp.lt.s32.totalorder %s257_s16, %s257_s16 }
  0x5e   : > { %p824_p9 = scmp.ne.s32.totalorder %s257_s16, %s823_s13  ;;  %p832_p12 = scmp.lt.s32.totalorder %s823_s13, %s823_s13 }
  0x60   : > { %p826_p10 = pnand %p824_p9, %p1082_p8  ;;  %p833_p1 = por %p832_p12, %p831_p11 }
  0x62   : > { %p827_p4 = pneg %p826_p10 }
  0x64   : > { %p834_p3 = pnand %p833_p1, %p827_p4 }
  0x66   : > { %837 = shalt.err (!%p834_p3)
}
  0x67   : > { %649 = dma.hbm_to_vmem [thread:$0]  (!%p1066_p6), %s1353_s4, 64, %s257_s16, [#allocation10]  }
  0x68   : > { %s838_s21 = scalar_lea.hbm %s1354_s5, 64 }
  0x69   : > { %p839_p13 = scmp.ne.s32.totalorder %s1354_s5, %s838_s21  ;;  %p845_p3 = scmp.lt.u32.totalorder %s838_s21, %s1354_s5 }
  0x6b   : > { %p841_p0 = pnand %p839_p13, %p1082_p8 }
  0x6d   : > { %p842_p1 = pneg %p841_p0 }
  0x6f   : > { %p847_p2 = pnand %p845_p3, %p842_p1 }
  0x71   : > { %850 = shalt.err (!%p847_p2)
}
  0x72   : > { %s851_s10 = scalar_lea.vmem %s268_s23, 64  ;;  %p859_p10 = scmp.lt.s32.totalorder %s268_s23, %s268_s23 }
  0x73   : > { %p852_p5 = scmp.ne.s32.totalorder %s268_s23, %s851_s10  ;;  %p860_p4 = scmp.lt.s32.totalorder %s851_s10, %s851_s10 }
  0x75   : > { %p854_p7 = pnand %p852_p5, %p1082_p8  ;;  %p861_p11 = por %p860_p4, %p859_p10 }
  0x77   : > { %p855_p9 = pneg %p854_p7 }
  0x79   : > { %p862_p12 = pnand %p861_p11, %p855_p9 }
  0x7b   : > { %865 = shalt.err (!%p862_p12)
}
  0x7c   : > { %652 = dma.hbm_to_vmem [thread:$0]  (!%p1066_p6), %s1354_s5, 64, %s268_s23, [#allocation13]  }
  0x7d   : > { %s584_s22 = sadd.s32 4294967294, %s974_s29   ;;  %s1189_s14 = sadd.s32 1, %s974_s29  }
  0x7e   : > { %s34_s15 = sadd.s32 1, %s970_s28  ;;  %s31_s17 = ssub.s32 %s974_s29, %s1189_s14 }
  0x7f   : > { %p41_p8 = scmp.ne.s32.totalorder %s970_s28, %s966_s27  ;;  %p32_p13 = scmp.eq.s32.totalorder %s31_s17, 0 }
  0x80   : > { %p42_p0 = scmp.eq.s32.totalorder %s974_s29, 0  ;;  %p47_p1 = scmp.ne.s32.totalorder %s966_s27, %s962_s26 }
  0x81   : > { %p197_p3 = scmp.eq.s32.totalorder %s1048_s8, 1  ;;  %p1363_p5 = scmp.eq.s32.totalorder %s1048_s8, 0 }
  0x82   : > { %s1201_s13 = scalar_select %p32_p13, %s970_s28, %s34_s15  }
  0x83   : > { %p43_p2 = por %p42_p0, %p41_p8  ;;  %p1205_p7 = por %p1363_p5, %p47_p1 }
  0x84   : > { %p1209_p6 = por %p197_p3, %p41_p8  ;;  %p203_p9 = scmp.eq.s32.totalorder %s584_s22, 1 }
  0x85   : > { %p666_p10 = scmp.lt.s32.totalorder %s974_s29, 2  ;;  %s281_s19 = sand.u32 1, %s970_s28  }
  0x86   : > { %s1365_s23 = scalar_select %p1209_p6, 1, 0 }
  0x87   : > { %p1215_p4 = por %p203_p9, %p47_p1  ;;  %s592_s20 = sshll.u32 %s281_s19, 3 }
  0x88   : > { %s611_s21 = sshll.u32 %s974_s29, 7  ;;  %s285_s6 = scalar_lea.vmem [#allocation3], %s592_s20 }
  0x89   : > { %s1366_s11 = scalar_select %p1215_p4, 1, 0 }
  0x8a   : > { %s1223_s25 = scalar_lea.hbm %s1349_s0, %s611_s21  ;;  %s293_s10 = sshll.u32 %s285_s6, 4  ;;  %s1229_s10 = int_to_ptr.vmem [resolvable:$true] %s293_s10 }
  0x8b   : > { %p1225_p11 = pnand %p666_p10, %p43_p2  ;;  %s282_s12 = scalar_lea.sflag [#allocation4], %s281_s19 }
  0x8c   : > { %s866_s22 = scalar_lea.hbm %s1223_s25, 128  ;;  %s871_s20 = scalar_lea.hbm %s1349_s0, 256 }
  0x8d   : > { %p867_p12 = scmp.ne.s32.totalorder %s1223_s25, %s866_s22  ;;  %p868_p8 = pneg %p1225_p11 }
  0x8e   : > { %p872_p1 = scmp.lt.u32.totalorder %s1223_s25, %s1349_s0  ;;  %p873_p3 = scmp.lt.u32.totalorder %s871_s20, %s866_s22 }
  0x8f   : > { %p869_p13 = pnand %p868_p8, %p867_p12  ;;  %p875_p5 = scmp.lt.u32.totalorder %s866_s22, %s1223_s25 }
  0x90   : > { %p874_p2 = por %p873_p3, %p872_p1 }
  0x91   : > { %p870_p0 = pneg %p869_p13 }
  0x92   : > { %p876_p9 = por %p875_p5, %p874_p2 }
  0x94   : > { %p877_p10 = pnand %p876_p9, %p870_p0 }
  0x96   : > { %880 = shalt.err (!%p877_p10)
}
  0x97   : > { %s881_s19 = scalar_lea.vmem %s1229_s10, 128  ;;  %s981_s24 = smov [#allocation3]  }
  0x98   : > { %p882_p12 = scmp.ne.s32.totalorder %s1229_s10, %s881_s19  ;;  %s886_s6 = sshll.u32 %s981_s24, 4  ;;  %s887_s6 = int_to_ptr.vmem [resolvable:$false] %s886_s6 }
  0x99   : > { %s888_s15 = scalar_lea.vmem %s887_s6, 256  ;;  %p889_p6 = scmp.lt.s32.totalorder %s1229_s10, %s887_s6 }
  0x9a   : > { %p884_p13 = pnand %p882_p12, %p868_p8  ;;  %p890_p1 = scmp.lt.s32.totalorder %s888_s15, %s881_s19 }
  0x9c   : > { %p885_p4 = pneg %p884_p13  ;;  %p891_p3 = por %p890_p1, %p889_p6 }
  0x9e   : > { %p892_p2 = pnand %p891_p3, %p885_p4 }
  0xa0   : > { %895 = shalt.err (!%p892_p2)
}
  0xa1   : > { %656 = dma.hbm_to_vmem [thread:$0]  (!%p1225_p11), %s1223_s25, 128, %s1229_s10, %s282_s12  }
  0xa2   : > { %p1368_p0 = scmp.ne.s32.totalorder %s1360_s9, 0 }
  0xa3   : > { %s1259_s22 = sand.u32 (!%p1368_p0), 1, %s966_s27  }
  0xa4   : > { %302 = sbr.rel (%p1368_p0) target bundleno = 672 (0x2a0), region = 48  ;;  %s596_s17 = sshll.u32 (!%p1368_p0), %s1259_s22, 3 }
  0xa5   : > { %s305_s20 = scalar_lea.sflag (!%p1368_p0), [#allocation4], %s1259_s22  ;;  %s308_s21 = scalar_lea.vmem (!%p1368_p0), [#allocation3], %s596_s17 }
  0xab   : > { %941 = dma.done.wait (%p1205_p7), %s305_s20, 128  }
  0xac   : > { %943 = vsyncadd (%p1205_p7), %s305_s20, 4294967168  ;;  %p1369_p6 = scmp.eq.s32.totalorder %s1048_s8, 0 }
  0xae   : > { %945 = dma.done.wait (%p1369_p6), [#allocation7], 128   ;;  %p1370_p4 = pmov %p1369_p6 }
  0xb0   : > { %947 = vsyncadd (%p1370_p4), [#allocation7], 4294967168  ;;  %p1371_p11 = pmov %p1370_p4 }
  0xb1   : > { %p1372_p8 = pmov %p1370_p4 }
  0xb2   : > { %949 = dma.done.wait (%p1371_p11), [#allocation10], 80  }
  0xb3   : > { %951 = vsyncadd (%p1372_p8), [#allocation10], 4294967216  ;;  %p1373_p5 = pmov %p1370_p4 }
  0xb4   : > { %p1374_p9 = pmov %p1370_p4 }
  0xb5   : > { %953 = dma.done.wait (%p1373_p5), [#allocation13], 64  }
  0xb6   : > { %955 = vsyncadd (%p1374_p9), [#allocation13], 4294967232  ;;  %vm363_vm0 = vcmask 1043456   ;;  %v1281_v0 = vld [vmem:[%s308_s21] sm:$0xff]  ;;  %v399_v5 = vld [vmem:[#allocation6] sm:$0xf]  ;;  %v383_v14 = vlaneseq }
  0xb7   : > { %v1285_v1 = vcombine.high %v1281_v0, %v1281_v0  ;;  %v364_v2 = vsel %vm363_vm0, %v1281_v0, -inf  ;;  %v982_v6 = vmov 0   ;;  %v369_v7 = vld [vmem:[#allocation8] sm:$0xf]  ;;  %vm371_vm1 = vcmask 11264   ;;  %s421_s9 = sld [smem:[#allocation2]] }
  0xb8   : > { %711 = vset.pattern.permute.xlu1 %v982_v6  ;;  %712 = vset.pattern.permute.xlu0 %v982_v6  ;;  %v384_v17 = vshrl.u32 %v383_v14, 7  ;;  %v379_v18 = vld [vmem:[#allocation9] sm:$0x1]  ;;  %v382_v23 = vld [vmem:[#allocation11] sm:$0xf]  ;;  %s612_s18 = sshll.u32 %s1048_s8, 7 }
  0xb9   : > { %v365_v3 = vsel %vm363_vm0, %v1285_v1, -inf  ;;  %402 = vperm.xlu1 %711, %v399_v5   ;;  %v391_v27 = vld [vmem:[#allocation12] sm:$0xf]  ;;  %s358_s25 = scalar_lea.vmem [#allocation14], %s596_s17  ;;  %s1305_s30 = scalar_lea.hbm %s1356_s7, %s612_s18 }
  0xba   : > { %v366_v4 = vmax.f32 %v364_v2, %v365_v3  ;;  %v385_v21 = vsub.s32 0, %v384_v17  ;;  %s466_s10 = sshll.u32 %s358_s25, 4  ;;  %s452_s8 = scalar_lea.sflag [#allocation5], %s1259_s22  ;;  %s1307_s10 = int_to_ptr.vmem [resolvable:$true] %s466_s10 }
  0xbb   : > { %s896_s19 = scalar_lea.vmem %s1307_s10, 128  ;;  %p1375_p10 = scmp.ne.s32.totalorder %s1365_s23, 0 }
  0xbc   : > { %367 = vmax.xlane.f32.xlu0 %v366_v4  ;;  %p897_p7 = scmp.ne.s32.totalorder %s1307_s10, %s896_s19  ;;  %s983_s24 = smov [#allocation14]  }
  0xbd   : > { %v422_v50 = vstv %s421_s9  ;;  %s900_s6 = sshll.u32 %s983_s24, 4  ;;  %s901_s6 = int_to_ptr.vmem [resolvable:$false] %s900_s6 }
  0xbe   : > { %p898_p12 = pnand %p897_p7, %p1375_p10  ;;  %s902_s15 = scalar_lea.vmem %s901_s6, 256 }
  0xbf   : > { %p903_p1 = scmp.lt.s32.totalorder %s1307_s10, %s901_s6  ;;  %p904_p3 = scmp.lt.s32.totalorder %s902_s15, %s896_s19 }
  0xc0   : > { %p899_p13 = pneg %p898_p12 }
  0xc1   : > { %p905_p2 = por %p904_p3, %p903_p1 }
  0xc3   : > { %p906_p0 = pnand %p905_p2, %p899_p13 }
 0x138   : > { %v403_v34 = vpop.permute.xlu1 %402 }
 0x139   : > { %v405_v35 = vmul.f32 %v403_v34, %v1281_v0  ;;  %v406_v36 = vmul.f32 %v403_v34, %v1285_v1 }
 0x13b   : > { %v407_v37 = vsel %vm363_vm0, %v405_v35, 0.0  ;;  %v414_v38 = vsel %vm363_vm0, %v406_v36, 0.0 }
 0x13c   : > { %v408_v39 = vrot.slane %v407_v37, 4  ;;  %v415_v40 = vrot.slane %v414_v38, 4 }
 0x13e   : > { %v409_v41 = vadd.f32 %v408_v39, %v407_v37  ;;  %v416_v42 = vadd.f32 %v415_v40, %v414_v38 }
 0x140   : > { %v410_v43 = vrot.slane %v409_v41, 2  ;;  %v417_v44 = vrot.slane %v416_v42, 2 }
 0x142   : > { %v411_v45 = vadd.f32 %v410_v43, %v409_v41  ;;  %v418_v46 = vadd.f32 %v417_v44, %v416_v42 }
 0x144   : > { %v412_v47 = vrot.slane %v411_v45, 1  ;;  %v419_v48 = vrot.slane %v418_v46, 1 }
 0x146   : > { %v413_v49 = vadd.f32 %v412_v47, %v411_v45  ;;  %v420_v51 = vadd.f32 %v419_v48, %v418_v46 }
 0x148   : > { %v423_v52 = vadd.f32 %v422_v50, %v413_v49  ;;  %v424_v53 = vadd.f32 %v422_v50, %v420_v51 }
 0x149   : > { %v368_v8 = vpop.xlane.xlu0 %367 }
 0x14a   : > { %v370_v9 = vmul.f32 %v369_v7, %v368_v8  ;;  %v604_v54 = vmul.f32 -1.442695, %v423_v52  ;;  %v605_v55 = vmul.f32 -1.442695, %v424_v53 }
 0x14c   : > { %v372_v10 = vsel %vm371_vm1, %v370_v9, 0.0 }
 0x14d   : > { %v373_v11 = vrot.slane %v372_v10, 4 }
 0x14f   : > { %v374_v12 = vadd.f32 %v373_v11, %v372_v10 }
 0x151   : > { %v375_v13 = vrot.slane %v374_v12, 2 }
 0x153   : > { %v376_v15 = vadd.f32 %v375_v13, %v374_v12 }
 0x155   : > { %v377_v16 = vrot.slane %v376_v15, 1 }
 0x157   : > { %v378_v19 = vadd.f32 %v377_v16, %v376_v15 }
 0x159   : > { %v380_v20 = vadd.f32 %v379_v18, %v378_v19 }
 0x15b   : > { %v381_v22 = vmax.f32 %v380_v20, 0.0 }
 0x15d   : > { %v386_v24 = vrot.slane %v381_v22, %v385_v21 }
 0x15f   : > { %v387_v25 = vmul.f32 %v386_v24, %v382_v23 }
 0x161   : > { %v388_v26 = vsel %vm371_vm1, %v387_v25, 0.0 }
 0x162   : > { %389 = vadd.xlane.f32.xlu0 %v388_v26 }
 0x1ef   : > { %v390_v28 = vpop.xlane.xlu0 %389 }
 0x1f0   : > { %v392_v29 = vadd.f32 %v391_v27, %v390_v28 }
 0x1f2   : > { %v603_v30 = vmul.f32 -1.442695, %v392_v29 }
 0x1f4   : > { %714 = vpow2.f32 %v603_v30 }
 0x1fe   : > { %v715_v31 = vpop.eup %714 }
 0x1ff   : > { %v396_v32 = vadd.f32 1.0, %v715_v31 }
 0x201   : > { %716 = vrcp.f32 %v396_v32 }
 0x202   : > { %718 = vpow2.f32 %v604_v54 }
 0x203   : > { %720 = vpow2.f32 %v605_v55 }
 0x20b   : > { %v717_v33 = vpop.eup %716 }
 0x20c   : > { %439 = vperm.xlu1 %711, %v717_v33   ;;  %v719_v56 = vpop.eup %718 }
 0x20d   : > { %v721_v57 = vpop.eup %720  ;;  %v431_v58 = vadd.f32 1.0, %v719_v56 }
 0x20e   : > { %v432_v59 = vadd.f32 1.0, %v721_v57 }
 0x20f   : > { %722 = vrcp.f32 %v431_v58 }
 0x210   : > { %724 = vrcp.f32 %v432_v59 }
 0x219   : > { %v723_v60 = vpop.eup %722 }
 0x21a   : > { %v725_v61 = vpop.eup %724 }
 0x28b   : > { %v440_v62 = vpop.permute.xlu1 %439 }
 0x28c   : > { %v442_v63 = vadd.f32 %v723_v60, %v440_v62  ;;  %v443_v2 = vadd.f32 %v725_v61, %v440_v62 }
 0x28e   : > { %v444_v3 = vmul.f32 %v442_v63, %v1281_v0  ;;  %v445_v4 = vmul.f32 %v443_v2, %v1285_v1 }
 0x290   : > { %v448_v5 = vcombine.low %v444_v3, %v445_v4 }
 0x292   : > { %450 = vst [vmem:[%s358_s25] sm:$0xff] %v448_v5 }
 0x293   : > { %909 = shalt.err (!%p906_p0)
}
 0x294   : > { %s910_s22 = scalar_lea.hbm %s1305_s30, 128  ;;  %s914_s21 = scalar_lea.hbm %s1356_s7, 256 }
 0x295   : > { %p911_p6 = scmp.ne.s32.totalorder %s1305_s30, %s910_s22  ;;  %p915_p8 = scmp.lt.u32.totalorder %s1305_s30, %s1356_s7 }
 0x296   : > { %p916_p5 = scmp.lt.u32.totalorder %s914_s21, %s910_s22  ;;  %p918_p7 = scmp.lt.u32.totalorder %s910_s22, %s1305_s30 }
 0x297   : > { %p912_p4 = pnand %p911_p6, %p1375_p10 }
 0x298   : > { %p917_p9 = por %p916_p5, %p915_p8 }
 0x299   : > { %p913_p11 = pneg %p912_p4 }
 0x29a   : > { %p919_p12 = por %p918_p7, %p917_p9 }
 0x29c   : > { %p920_p13 = pnand %p919_p12, %p913_p11 }
 0x29e   : > { %923 = shalt.err (!%p920_p13)
}
 0x29f   : > { %635 = dma.vmem_to_hbm [thread:$0]  (%p1375_p10), %s1307_s10, 128, %s1305_s30, %s452_s8  }
 0x2a0 PF: > { %s478_s25 = sand.u32 1, %s962_s26   ;;  %p1376_p1 = scmp.ne.s32.totalorder %s1366_s11, 0 }
 0x2a1   : > { %p1377_p3 = scmp.ge.s32.totalorder %s974_s29, 2  ;;  %s479_s16 = scalar_lea.sflag [#allocation5], %s478_s25 }
 0x2a3   : > { %p658_p2 = pnand %p1377_p3, %p1376_p1 }
 0x2a5   : > { %957 = dma.done.wait (!%p658_p2), %s479_s16, 128  }
 0x2a6   : > { %959 = vsyncadd (!%p658_p2), %s479_s16, 4294967168  ;;  %p24_p0 = scmp.ge.s32.totalorder %s1189_s14, 4   ;;  %s1378_s26 = smov %s966_s27 }
 0x2a7   : > { %s1379_s27 = smov %s970_s28  ;;  %s1380_s28 = smov %s1201_s13 }
 0x2a8   : > { %s1381_s29 = smov %s1189_s14  ;;  %26 = sbr.rel (!%p24_p0) target bundleno = 10 (0xa), region = 113 }
 0x2af   :  { %484 = vsyncpa [#allocation4], 1 }
 0x2b0   :  { %486 = vsyncpa [#allocation4 + $0x1], 1 }
 0x2b1   :  { %487 = vsyncpa [#allocation7], 1 }
 0x2b2   :  { %488 = vsyncpa [#allocation10], 1 }
 0x2b3   :  { %489 = vsyncpa [#allocation13], 1 }
 0x2b4   :  { %490 = vsyncpa [#allocation5], 1 }
 0x2b5   :  { %492 = vsyncpa [#allocation5 + $0x1], 1 }

</bundles_post_ra>
